<compile_context>
chip_gen: v5e
topology: v5e:2x2
jax: 0.10.0
libtpu: 0.0.40
codegen_flags: <defaults>
</compile_context>

<pallas_src>
import functools

import jax
import jax.numpy as jnp
import numpy as np
from jax.experimental import pallas as pl
from jax.experimental.pallas import tpu as pltpu


def _ceil_to(a, b):
    return ((a + b - 1) // b) * b


def _sublane_multiple(dtype):
    # Min second-to-last tile: 8 rows for 4-byte, 16 for 2-byte, 32 for 1-byte.
    return max(8, 32 // jnp.dtype(dtype).itemsize)


def _pick_row_tile(rows, bytes_per_row, sub,
                   *, target_block_bytes=1 << 20, min_steps=8):
    """Rows per block: ~1 MiB of (in + out) VMEM per step, at least `min_steps`
    grid steps when there are enough rows (pipelining + both v7x TensorCores),
    and a multiple of the dtype's sublane tile."""
    if rows <= sub:
        return rows                                   # single block == full dim
    cap_vmem = max(sub, (target_block_bytes // max(bytes_per_row, 1)) // sub * sub)
    cap_steps = max(sub, _ceil_to(pl.cdiv(rows, min_steps), sub))
    return min(cap_vmem, cap_steps, max(sub, rows // sub * sub))


# ----------------------------------------------------------------- kernels --

def _copy_kernel(x_ref, o_ref):
    # Aligned path: the input BlockSpec already dropped the chomped columns.
    o_ref[...] = x_ref[...]


def _slice_kernel(x_ref, o_ref):
    # Fallback path: keep the first Wo columns of the block.
    o_ref[...] = x_ref[:, : o_ref.shape[-1]]


def _grouped_kernel(x_ref, o_ref, *, groups, w, w_out):
    # Lane-dense path: blocks are [TM, groups*w] -> [TM, groups*w_out];
    # drop the last (w - w_out) columns of every group via static lane slices.
    for g in range(groups):
        o_ref[:, g * w_out:(g + 1) * w_out] = x_ref[:, g * w: g * w + w_out]


# ----------------------------------------------------------------- wrapper --

def chomp1d(x, chomp_size):
    """x: [B, C, H, W] -> x[:, :, :, :W - chomp_size] via a Pallas TPU kernel.

    `chomp_size` must be a static Python int (it parameterizes shapes)."""
    assert isinstance(chomp_size, int), "chomp_size must be a static Python int"
    B, C, H, W = x.shape
    assert 0 < chomp_size < W
    Wo = W - chomp_size
    itemsize = jnp.dtype(x.dtype).itemsize
    sub = _sublane_multiple(x.dtype)

    if Wo % 128 == 0:
        # Chomp inside the input BlockSpec: dropped columns never leave HBM.
        rows, cols_in, cols_out = B * C * H, W, Wo
        x2 = x.reshape(rows, cols_in)
        tm = _pick_row_tile(rows, 2 * cols_out * itemsize, sub)
        kernel = _copy_kernel
        in_spec = pl.BlockSpec((tm, cols_out), lambda i: (i, 0))
        read_bytes = rows * cols_out * itemsize
    elif W < 128 and 1 < H <= 128:
        # TCN case (W = T+1, small): fold H into the lane axis so the HBM DMAs
        # and the out_spec are lane-dense instead of ~W-lane strips.
        rows, cols_in, cols_out = B * C, H * W, H * Wo
        x2 = x.reshape(rows, cols_in)
        tm = _pick_row_tile(rows, (cols_in + cols_out) * itemsize, sub)
        kernel = functools.partial(_grouped_kernel, groups=H, w=W, w_out=Wo)
        in_spec = pl.BlockSpec((tm, cols_in), lambda i: (i, 0))
        read_bytes = rows * cols_in * itemsize
    else:
        # Generic fallback: full-W rows, in-kernel slice of the last dim.
        rows, cols_in, cols_out = B * C * H, W, Wo
        x2 = x.reshape(rows, cols_in)
        tm = _pick_row_tile(rows, (cols_in + cols_out) * itemsize, sub)
        kernel = _slice_kernel
        in_spec = pl.BlockSpec((tm, cols_in), lambda i: (i, 0))
        read_bytes = rows * cols_in * itemsize

    write_bytes = rows * cols_out * itemsize

    out = pl.pallas_call(
        kernel,
        out_shape=jax.ShapeDtypeStruct((rows, cols_out), x.dtype),
        grid=(pl.cdiv(rows, tm),),
        in_specs=[in_spec],
        out_specs=pl.BlockSpec((tm, cols_out), lambda i: (i, 0)),
        compiler_params=pltpu.CompilerParams(
            dimension_semantics=("parallel",),
            vmem_limit_bytes=32 * 1024 * 1024),
        cost_estimate=pl.CostEstimate(
            flops=0, transcendentals=0,
            bytes_accessed=read_bytes + write_bytes),
    )(x2)

    return out.reshape(B, C, H, Wo)


if __name__ == "__main__":
    key = jax.random.PRNGKey(0)

    def check(x, chomp):
        y = jax.jit(lambda v: chomp1d(v, chomp))(x)
        jax.block_until_ready(y)
        ref = x[:, :, :, :-chomp]
        assert y.shape == ref.shape and y.dtype == x.dtype
        np.testing.assert_array_equal(np.asarray(y), np.asarray(ref))

    k1, k2, k3 = jax.random.split(key, 3)

    # 1) TCN shapes (grouped lane-dense path): Conv2d(hidden, hidden, (1, 2),
    #    padding=(0, 1)) on [B, hidden, nodes, T] gives W = T + 1; Chomp1d(1).
    check(jax.random.normal(k1, (2, 32, 16, 9), jnp.float32), 1)

    # 2) Aligned path (Wo % 128 == 0): chomp expressed in the input BlockSpec.
    check(jax.random.normal(k2, (2, 4, 8, 256), jnp.float32), 128)

    # 3) Fallback path + bf16 (dtype-aware sublane tile, ragged last block).
    check(jax.random.normal(k3, (1, 3, 10, 200), jnp.bfloat16), 7)

    print("KERNEL_OK")
</pallas_src>

<mosaic_0001>
module attributes {stable_mosaic.version = 11 : i64} {
  func.func @_grouped_kernel(%arg0: i32, %arg1: memref<8x144xf32, #tpu.memory_space<vmem>>, %arg2: memref<8x128xf32, #tpu.memory_space<vmem>>) attributes {dimension_semantics = [#tpu.dimension_semantics<parallel>], iteration_bounds = array<i64: 8>, scalar_prefetch = 0 : i64, scratch_operands = 0 : i64, tpu.core_type = #tpu.core_type<tc>, window_params = [{transform_indices = @transform_0, window_bounds = array<i64: 8, 144>}, {transform_indices = @transform_1, window_bounds = array<i64: 8, 128>}]} {
    %c0 = arith.constant 0 : index
    %c0_0 = arith.constant 0 : index
    %0 = vector.load %arg1[%c0, %c0_0] : memref<8x144xf32, #tpu.memory_space<vmem>>, vector<8x8xf32>
    %c0_1 = arith.constant 0 : index
    %c0_2 = arith.constant 0 : index
    %1 = vector.load %arg2[%c0_1, %c0_2] : memref<8x128xf32, #tpu.memory_space<vmem>>, vector<8x8xf32>
    tpu.vector_store %arg2[%c0_1, %c0_2], %0 {strides = array<i32>} : memref<8x128xf32, #tpu.memory_space<vmem>>, vector<8x8xf32>,
    %c0_3 = arith.constant 0 : index
    %c9 = arith.constant 9 : index
    %2 = vector.load %arg1[%c0_3, %c9] : memref<8x144xf32, #tpu.memory_space<vmem>>, vector<8x8xf32>
    %c0_4 = arith.constant 0 : index
    %c8 = arith.constant 8 : index
    %3 = vector.load %arg2[%c0_4, %c8] : memref<8x128xf32, #tpu.memory_space<vmem>>, vector<8x8xf32>
    tpu.vector_store %arg2[%c0_4, %c8], %2 {strides = array<i32>} : memref<8x128xf32, #tpu.memory_space<vmem>>, vector<8x8xf32>,
    %c0_5 = arith.constant 0 : index
    %c18 = arith.constant 18 : index
    %4 = vector.load %arg1[%c0_5, %c18] : memref<8x144xf32, #tpu.memory_space<vmem>>, vector<8x8xf32>
    %c0_6 = arith.constant 0 : index
    %c16 = arith.constant 16 : index
    %5 = vector.load %arg2[%c0_6, %c16] : memref<8x128xf32, #tpu.memory_space<vmem>>, vector<8x8xf32>
    tpu.vector_store %arg2[%c0_6, %c16], %4 {strides = array<i32>} : memref<8x128xf32, #tpu.memory_space<vmem>>, vector<8x8xf32>,
    %c0_7 = arith.constant 0 : index
    %c27 = arith.constant 27 : index
    %6 = vector.load %arg1[%c0_7, %c27] : memref<8x144xf32, #tpu.memory_space<vmem>>, vector<8x8xf32>
    %c0_8 = arith.constant 0 : index
    %c24 = arith.constant 24 : index
    %7 = vector.load %arg2[%c0_8, %c24] : memref<8x128xf32, #tpu.memory_space<vmem>>, vector<8x8xf32>
    tpu.vector_store %arg2[%c0_8, %c24], %6 {strides = array<i32>} : memref<8x128xf32, #tpu.memory_space<vmem>>, vector<8x8xf32>,
    %c0_9 = arith.constant 0 : index
    %c36 = arith.constant 36 : index
    %8 = vector.load %arg1[%c0_9, %c36] : memref<8x144xf32, #tpu.memory_space<vmem>>, vector<8x8xf32>
    %c0_10 = arith.constant 0 : index
    %c32 = arith.constant 32 : index
    %9 = vector.load %arg2[%c0_10, %c32] : memref<8x128xf32, #tpu.memory_space<vmem>>, vector<8x8xf32>
    tpu.vector_store %arg2[%c0_10, %c32], %8 {strides = array<i32>} : memref<8x128xf32, #tpu.memory_space<vmem>>, vector<8x8xf32>,
    %c0_11 = arith.constant 0 : index
    %c45 = arith.constant 45 : index
    %10 = vector.load %arg1[%c0_11, %c45] : memref<8x144xf32, #tpu.memory_space<vmem>>, vector<8x8xf32>
    %c0_12 = arith.constant 0 : index
    %c40 = arith.constant 40 : index
    %11 = vector.load %arg2[%c0_12, %c40] : memref<8x128xf32, #tpu.memory_space<vmem>>, vector<8x8xf32>
    tpu.vector_store %arg2[%c0_12, %c40], %10 {strides = array<i32>} : memref<8x128xf32, #tpu.memory_space<vmem>>, vector<8x8xf32>,
    %c0_13 = arith.constant 0 : index
    %c54 = arith.constant 54 : index
    %12 = vector.load %arg1[%c0_13, %c54] : memref<8x144xf32, #tpu.memory_space<vmem>>, vector<8x8xf32>
    %c0_14 = arith.constant 0 : index
    %c48 = arith.constant 48 : index
    %13 = vector.load %arg2[%c0_14, %c48] : memref<8x128xf32, #tpu.memory_space<vmem>>, vector<8x8xf32>
    tpu.vector_store %arg2[%c0_14, %c48], %12 {strides = array<i32>} : memref<8x128xf32, #tpu.memory_space<vmem>>, vector<8x8xf32>,
    %c0_15 = arith.constant 0 : index
    %c63 = arith.constant 63 : index
    %14 = vector.load %arg1[%c0_15, %c63] : memref<8x144xf32, #tpu.memory_space<vmem>>, vector<8x8xf32>
    %c0_16 = arith.constant 0 : index
    %c56 = arith.constant 56 : index
    %15 = vector.load %arg2[%c0_16, %c56] : memref<8x128xf32, #tpu.memory_space<vmem>>, vector<8x8xf32>
    tpu.vector_store %arg2[%c0_16, %c56], %14 {strides = array<i32>} : memref<8x128xf32, #tpu.memory_space<vmem>>, vector<8x8xf32>,
    %c0_17 = arith.constant 0 : index
    %c72 = arith.constant 72 : index
    %16 = vector.load %arg1[%c0_17, %c72] : memref<8x144xf32, #tpu.memory_space<vmem>>, vector<8x8xf32>
    %c0_18 = arith.constant 0 : index
    %c64 = arith.constant 64 : index
    %17 = vector.load %arg2[%c0_18, %c64] : memref<8x128xf32, #tpu.memory_space<vmem>>, vector<8x8xf32>
    tpu.vector_store %arg2[%c0_18, %c64], %16 {strides = array<i32>} : memref<8x128xf32, #tpu.memory_space<vmem>>, vector<8x8xf32>,
    %c0_19 = arith.constant 0 : index
    %c81 = arith.constant 81 : index
    %18 = vector.load %arg1[%c0_19, %c81] : memref<8x144xf32, #tpu.memory_space<vmem>>, vector<8x8xf32>
    %c0_20 = arith.constant 0 : index
    %c72_21 = arith.constant 72 : index
    %19 = vector.load %arg2[%c0_20, %c72_21] : memref<8x128xf32, #tpu.memory_space<vmem>>, vector<8x8xf32>
    tpu.vector_store %arg2[%c0_20, %c72_21], %18 {strides = array<i32>} : memref<8x128xf32, #tpu.memory_space<vmem>>, vector<8x8xf32>,
    %c0_22 = arith.constant 0 : index
    %c90 = arith.constant 90 : index
    %20 = vector.load %arg1[%c0_22, %c90] : memref<8x144xf32, #tpu.memory_space<vmem>>, vector<8x8xf32>
    %c0_23 = arith.constant 0 : index
    %c80 = arith.constant 80 : index
    %21 = vector.load %arg2[%c0_23, %c80] : memref<8x128xf32, #tpu.memory_space<vmem>>, vector<8x8xf32>
    tpu.vector_store %arg2[%c0_23, %c80], %20 {strides = array<i32>} : memref<8x128xf32, #tpu.memory_space<vmem>>, vector<8x8xf32>,
    %c0_24 = arith.constant 0 : index
    %c99 = arith.constant 99 : index
    %22 = vector.load %arg1[%c0_24, %c99] : memref<8x144xf32, #tpu.memory_space<vmem>>, vector<8x8xf32>
    %c0_25 = arith.constant 0 : index
    %c88 = arith.constant 88 : index
    %23 = vector.load %arg2[%c0_25, %c88] : memref<8x128xf32, #tpu.memory_space<vmem>>, vector<8x8xf32>
    tpu.vector_store %arg2[%c0_25, %c88], %22 {strides = array<i32>} : memref<8x128xf32, #tpu.memory_space<vmem>>, vector<8x8xf32>,
    %c0_26 = arith.constant 0 : index
    %c108 = arith.constant 108 : index
    %24 = vector.load %arg1[%c0_26, %c108] : memref<8x144xf32, #tpu.memory_space<vmem>>, vector<8x8xf32>
    %c0_27 = arith.constant 0 : index
    %c96 = arith.constant 96 : index
    %25 = vector.load %arg2[%c0_27, %c96] : memref<8x128xf32, #tpu.memory_space<vmem>>, vector<8x8xf32>
    tpu.vector_store %arg2[%c0_27, %c96], %24 {strides = array<i32>} : memref<8x128xf32, #tpu.memory_space<vmem>>, vector<8x8xf32>,
    %c0_28 = arith.constant 0 : index
    %c117 = arith.constant 117 : index
    %26 = vector.load %arg1[%c0_28, %c117] : memref<8x144xf32, #tpu.memory_space<vmem>>, vector<8x8xf32>
    %c0_29 = arith.constant 0 : index
    %c104 = arith.constant 104 : index
    %27 = vector.load %arg2[%c0_29, %c104] : memref<8x128xf32, #tpu.memory_space<vmem>>, vector<8x8xf32>
    tpu.vector_store %arg2[%c0_29, %c104], %26 {strides = array<i32>} : memref<8x128xf32, #tpu.memory_space<vmem>>, vector<8x8xf32>,
    %c0_30 = arith.constant 0 : index
    %c126 = arith.constant 126 : index
    %28 = vector.load %arg1[%c0_30, %c126] : memref<8x144xf32, #tpu.memory_space<vmem>>, vector<8x8xf32>
    %c0_31 = arith.constant 0 : index
    %c112 = arith.constant 112 : index
    %29 = vector.load %arg2[%c0_31, %c112] : memref<8x128xf32, #tpu.memory_space<vmem>>, vector<8x8xf32>
    tpu.vector_store %arg2[%c0_31, %c112], %28 {strides = array<i32>} : memref<8x128xf32, #tpu.memory_space<vmem>>, vector<8x8xf32>,
    %c0_32 = arith.constant 0 : index
    %c135 = arith.constant 135 : index
    %30 = vector.load %arg1[%c0_32, %c135] : memref<8x144xf32, #tpu.memory_space<vmem>>, vector<8x8xf32>
    %c0_33 = arith.constant 0 : index
    %c120 = arith.constant 120 : index
    %31 = vector.load %arg2[%c0_33, %c120] : memref<8x128xf32, #tpu.memory_space<vmem>>, vector<8x8xf32>
    tpu.vector_store %arg2[%c0_33, %c120], %30 {strides = array<i32>} : memref<8x128xf32, #tpu.memory_space<vmem>>, vector<8x8xf32>,
    return
  }
  func.func @transform_0(%arg0: i32) -> (i32, i32) {
    %c0_i32 = arith.constant 0 : i32
    %c0_i32_0 = arith.constant 0 : i32
    return %arg0, %c0_i32 : i32, i32
  }
  func.func @transform_1(%arg0: i32) -> (i32, i32) {
    %c0_i32 = arith.constant 0 : i32
    %c0_i32_0 = arith.constant 0 : i32
    return %arg0, %c0_i32 : i32, i32
  }
}

</mosaic_0001>

<bundles_post_ra>
// kernel: _lambda_.1
= control target key start
LH: loop header
LB: loop body
LE: loop exit
PB: predicated region body
PF: predicated region fallthrough
CT: control target
= control target key end

     0   :  { %s349_s6 = smov 0   ;;  %s388_s0 = inlined_call_operand.vmem [shape: f32[64,144], index: 0, kind: input, shape index: {}]   ;;  %s389_s1 = inlined_call_operand.vmem [shape: f32[64,128], index: 1, kind: output, shape index: {}]  }
   0x1 LB: > { %s282_s7 = sadd.s32 4294967295, %s322_s6   ;;  %p286_p0 = scmp.ge.s32.totalorder %s322_s6, 1  ;;  %s322_s6 = sphi %s349_s6, %s11_s6  }
   0x2   : > { %p87_p1 = scmp.lt.s32.totalorder %s322_s6, 9 }
   0x4   : > { %p88_p2 = pnand %p286_p0, %p87_p1 }
   0x5   : > { %p106_p3 = scmp.lt.s32.totalorder (!%p88_p2), %s282_s7, 7  ;;  %s324_s12 = smov (!%p88_p2), 127  }
   0x6   : > { %91 = sbr.rel (%p88_p2) target bundleno = 171 (0xab), region = 24  ;;  %s325_s13 = smov (!%p88_p2), 125  }
   0x7   : > { %s326_s14 = smov (!%p88_p2), 123   ;;  %s327_s19 = smov (!%p88_p2), 126  }
   0x8   : > { %s328_s20 = smov (!%p88_p2), 124   ;;  %s329_s21 = smov (!%p88_p2), 122  }
   0x9   : > { %s330_s22 = smov (!%p88_p2), 121   ;;  %s331_s23 = smov (!%p88_p2), 120  }
   0xa   : > { %s332_s24 = smov (!%p88_p2), 119   ;;  %s333_s25 = smov (!%p88_p2), 118  }
   0xb   : > { %s391_s7 = smov (!%p106_p3, %s282_s7), 7  ;;  %vm116_vm0 = vcmask 64512   ;;  %s334_s26 = smov 117   ;;  %vm123_vm1 = vcmask 130112   ;;  %vm130_vm2 = vcmask 195712   ;;  %vm137_vm3 = vcmask 261312  }
   0xc   : > { %s292_s8 = sshll.u32 %s391_s7, 4  ;;  %s289_s15 = sshll.u32 %s391_s7, 3  ;;  %vm144_vm4 = vcmask 326912   ;;  %vm151_vm5 = vcmask 392512   ;;  %vm158_vm6 = vcmask 458112   ;;  %vm165_vm7 = vcmask 523712  }
   0xd   : > { %s360_s11 = scalar_lea.vmem %s388_s0, %s292_s8  ;;  %s366_s18 = scalar_lea.vmem %s389_s1, %s289_s15  ;;  %vm172_vm8 = vcmask 589312   ;;  %vm179_vm9 = vcmask 654912   ;;  %vm186_vm10 = vcmask 720512   ;;  %vm193_vm11 = vcmask 786112  }
   0xe   : > { %v118_v0 = vld [vmem:[%s360_s11] sm:$0xff]  ;;  %s335_s27 = smov 116   ;;  %s336_s28 = smov 115   ;;  %v222_v1 = vld [vmem:[%s360_s11 + $0x8] sm:$0xff]  ;;  %vm200_vm12 = vcmask 851712   ;;  %vm207_vm13 = vcmask 917312  }
   0xf   : > { %120 = vrot.lane.b32.xlu0 %v118_v0, %s324_s12  ;;  %134 = vrot.lane.b32.xlu1 %v118_v0, %s325_s13  ;;  %117 = vst.msk [vmem:[%s366_s18] sm:$0xff] %vm116_vm0, %v118_v0  ;;  %s337_s29 = smov 114   ;;  %s338_s30 = smov 113   ;;  %vm217_vm14 = vcmask 932864   ;;  %vm220_vm15 = vcmask 982912   ;;  %vm227_vm0 = vcmask 1048512  }
  0x10   : > { %148 = vrot.lane.b32.xlu2 %v118_v0, %s326_s14 }
  0x17   : > { %127 = vrot.lane.b32.xlu0 %v118_v0, %s327_s19  ;;  %141 = vrot.lane.b32.xlu1 %v118_v0, %s328_s20 }
  0x18   : > { %155 = vrot.lane.b32.xlu2 %v118_v0, %s329_s21 }
  0x1f   : > { %162 = vrot.lane.b32.xlu0 %v118_v0, %s330_s22  ;;  %169 = vrot.lane.b32.xlu1 %v118_v0, %s331_s23 }
  0x20   : > { %176 = vrot.lane.b32.xlu2 %v118_v0, %s332_s24 }
  0x27   : > { %183 = vrot.lane.b32.xlu0 %v118_v0, %s333_s25  ;;  %190 = vrot.lane.b32.xlu1 %v118_v0, %s334_s26 }
  0x28   : > { %197 = vrot.lane.b32.xlu2 %v118_v0, %s335_s27 }
  0x2f   : > { %204 = vrot.lane.b32.xlu0 %v118_v0, %s336_s28  ;;  %213 = vrot.lane.b32.xlu1 %v118_v0, %s337_s29 }
  0x30   : > { %215 = vrot.lane.b32.xlu2 %v222_v1, %s337_s29 }
  0x37   : > { %224 = vrot.lane.b32.xlu0 %v222_v1, %s338_s30 }
  0x6a   : > { %v149_v2 = vpop.permute.xlu2 %148 }
  0x72   : > { %v156_v3 = vpop.permute.xlu2 %155 }
  0x7a   : > { %v177_v8 = vpop.permute.xlu2 %176 }
  0x81   : > { %v121_v4 = vpop.permute.xlu0 %120  ;;  %v135_v5 = vpop.permute.xlu1 %134 }
  0x82   : > { %124 = vst.msk [vmem:[%s366_s18] sm:$0xff] %vm123_vm1, %v121_v4  ;;  %v198_v11 = vpop.permute.xlu2 %197 }
  0x89   : > { %v128_v6 = vpop.permute.xlu0 %127  ;;  %v142_v7 = vpop.permute.xlu1 %141 }
  0x8a   : > { %131 = vst.msk [vmem:[%s366_s18] sm:$0xff] %vm130_vm2, %v128_v6  ;;  %v216_v14 = vpop.permute.xlu2 %215 }
  0x8b   : > { %138 = vst.msk [vmem:[%s366_s18] sm:$0xff] %vm137_vm3, %v135_v5 }
  0x8c   : > { %145 = vst.msk [vmem:[%s366_s18] sm:$0xff] %vm144_vm4, %v142_v7 }
  0x8d   : > { %152 = vst.msk [vmem:[%s366_s18] sm:$0xff] %vm151_vm5, %v149_v2 }
  0x8e   : > { %159 = vst.msk [vmem:[%s366_s18] sm:$0xff] %vm158_vm6, %v156_v3 }
  0x91   : > { %v163_v9 = vpop.permute.xlu0 %162  ;;  %v170_v10 = vpop.permute.xlu1 %169 }
  0x92   : > { %166 = vst.msk [vmem:[%s366_s18] sm:$0xff] %vm165_vm7, %v163_v9 }
  0x93   : > { %173 = vst.msk [vmem:[%s366_s18] sm:$0xff] %vm172_vm8, %v170_v10 }
  0x94   : > { %180 = vst.msk [vmem:[%s366_s18] sm:$0xff] %vm179_vm9, %v177_v8 }
  0x99   : > { %v184_v12 = vpop.permute.xlu0 %183  ;;  %v191_v13 = vpop.permute.xlu1 %190 }
  0x9a   : > { %187 = vst.msk [vmem:[%s366_s18] sm:$0xff] %vm186_vm10, %v184_v12 }
  0x9b   : > { %194 = vst.msk [vmem:[%s366_s18] sm:$0xff] %vm193_vm11, %v191_v13 }
  0x9c   : > { %201 = vst.msk [vmem:[%s366_s18] sm:$0xff] %vm200_vm12, %v198_v11 }
  0xa1   : > { %v205_v15 = vpop.permute.xlu0 %204  ;;  %v214_v16 = vpop.permute.xlu1 %213 }
  0xa2   : > { %208 = vst.msk [vmem:[%s366_s18] sm:$0xff] %vm207_vm13, %v205_v15  ;;  %v218_v17 = vsel %vm217_vm14, %v214_v16, %v216_v14 }
  0xa3   : > { %221 = vst.msk [vmem:[%s366_s18] sm:$0xff] %vm220_vm15, %v218_v17 }
  0xa9   : > { %v225_v18 = vpop.permute.xlu0 %224 }
  0xaa   : > { %228 = vst.msk [vmem:[%s366_s18] sm:$0xff] %vm227_vm0, %v225_v18 }
  0xab PF: > { %s11_s6 = sadd.s32 1, %s322_s6  }
  0xac   : > { %p8_p4 = scmp.ge.s32.totalorder %s11_s6, 10  }
  0xae   :  { %10 = sbr.rel (!%p8_p4) target bundleno = 1 (0x1), region = 54 }

</bundles_post_ra>
